<compile_context>
chip_gen: v5e
topology: v5e:2x2
jax: 0.10.0
libtpu: 0.0.40
codegen_flags: <defaults>
</compile_context>

<pallas_src>
import jax
import jax.numpy as jnp
from jax.experimental import pallas as pl
from jax.experimental.pallas import tpu as pltpu


def _round_up(x, m):
    return pl.cdiv(x, m) * m


# ----------------------------------------------------------------------------
# One-time parameter preprocessing (hoisted out of the per-call hot path).
# ----------------------------------------------------------------------------
def prepare_discriminator_params(w1, b1, w2, b2, w3, b3):
    """Collapse fc1->fc2->fc3 (PyTorch (out,in) layout, no nonlinearity between
    them) into a single affine map and pad the output dim to a lane multiple.

    Returns (w_eff_p, b_eff_p, d_out) with:
      w_eff_p: (D_in, D_out_p)  so the kernel does a canonical x @ W matmul
      b_eff_p: (1, D_out_p)
      d_out:   true output width (columns beyond it are sliced off).
    """
    w1 = jnp.asarray(w1, jnp.float32)
    w2 = jnp.asarray(w2, jnp.float32)
    w3 = jnp.asarray(w3, jnp.float32)
    b1 = jnp.asarray(b1, jnp.float32)
    b2 = jnp.asarray(b2, jnp.float32)
    b3 = jnp.asarray(b3, jnp.float32)

    w32 = w3 @ w2                      # (40, 128)
    w_eff = (w32 @ w1).T               # (D_in, 40)  == W1^T @ W2^T @ W3^T
    b_eff = b1 @ w32.T + b2 @ w3.T + b3  # (40,)

    d_in, d_out = w_eff.shape
    d_out_p = _round_up(d_out, 128)
    w_eff_p = jnp.pad(w_eff, ((0, 0), (0, d_out_p - d_out)))
    b_eff_p = jnp.pad(b_eff, (0, d_out_p - d_out)).reshape(1, d_out_p)
    return w_eff_p, b_eff_p, d_out


# ----------------------------------------------------------------------------
# Kernel: one MXU matmul + bias + sigmoid per batch tile.
# ----------------------------------------------------------------------------
def _discriminator_kernel(x_ref, w_ref, b_ref, o_ref):
    # x_ref: (TB, D_in)      current batch tile
    # w_ref: (D_in, D_out_p) collapsed weight, grid-invariant (resident in VMEM)
    # b_ref: (1, D_out_p)    collapsed bias
    # o_ref: (TB, D_out_p)   sigmoid output (lane-dense; extra cols sliced outside)
    h = jnp.dot(x_ref[...], w_ref[...], preferred_element_type=jnp.float32)
    h = h + b_ref[...]
    # sigmoid(h) == 0.5 * (tanh(0.5*h) + 1): tanh goes to the EUP, no VPU divide.
    o_ref[...] = (0.5 * (jnp.tanh(0.5 * h) + 1.0)).astype(o_ref.dtype)


# ----------------------------------------------------------------------------
# Per-call wrapper.
# ----------------------------------------------------------------------------
def discriminator_forward(x, w_eff_p, b_eff_p, d_out, *,
                          tile_b=512, vmem_budget_bytes=32 << 20):
    """x: (B, D_in).  w_eff_p/b_eff_p/d_out from prepare_discriminator_params.
    Returns sigmoid(fc3(fc2(fc1(x)))) of shape (B, d_out)."""
    B, D_in = x.shape
    assert w_eff_p.shape[0] == D_in
    D_out_p = w_eff_p.shape[1]

    # --- batch tile selection -------------------------------------------------
    tile_b = max(8, _round_up(int(tile_b), 8))
    tile_b = min(tile_b, _round_up(B, 8))
    # v7x megacore: keep >= 2 grid steps so both TensorCores get a batch slice.
    tile_b = max(8, min(tile_b, _round_up(pl.cdiv(B, 2), 8)))

    # --- VMEM budget (holds on v5e/v6e/v7x) -----------------------------------
    x_item = jnp.dtype(x.dtype).itemsize
    w_item = jnp.dtype(w_eff_p.dtype).itemsize
    # Grid-invariant weight/bias are still double-buffered by default -> 2x.
    fixed_bytes = 2 * (D_in * D_out_p + D_out_p) * w_item
    # Double-buffered x and output tiles + one f32 intermediate row-block.
    per_row_bytes = 2 * (D_in + D_out_p) * x_item + D_out_p * 4
    avail = max(vmem_budget_bytes - fixed_bytes, 8 * per_row_bytes)
    vmem_rows = max(8, (avail // per_row_bytes) // 8 * 8)
    tile_b = max(8, min(tile_b, int(vmem_rows)))

    grid = (pl.cdiv(B, tile_b),)
    est_bytes = fixed_bytes + tile_b * per_row_bytes
    vmem_limit = int(min(max(2 * est_bytes, 32 << 20), 48 << 20))

    out = pl.pallas_call(
        _discriminator_kernel,
        out_shape=jax.ShapeDtypeStruct((B, D_out_p), x.dtype),
        grid_spec=pltpu.PrefetchScalarGridSpec(
            num_scalar_prefetch=0,
            grid=grid,
            in_specs=[
                pl.BlockSpec((tile_b, D_in), lambda i: (i, 0)),    # x tile
                pl.BlockSpec((D_in, D_out_p), lambda i: (0, 0)),   # W_eff (resident)
                pl.BlockSpec((1, D_out_p), lambda i: (0, 0)),      # b_eff (resident)
            ],
            out_specs=pl.BlockSpec((tile_b, D_out_p), lambda i: (i, 0)),
        ),
        compiler_params=pltpu.CompilerParams(
            dimension_semantics=("parallel",),      # batch tiles are independent
            vmem_limit_bytes=vmem_limit,
        ),
    )(x, w_eff_p, b_eff_p)

    return out[:, :d_out]


# ----------------------------------------------------------------------------
# Pure-JAX reference (faithful to the PyTorch forward) and demo.
# ----------------------------------------------------------------------------
def _ref_forward(x, w1, b1, w2, b2, w3, b3):
    h = x @ w1.T + b1
    h = h @ w2.T + b2
    h = h @ w3.T + b3
    return jax.nn.sigmoid(h)


if __name__ == "__main__":
    # Small shapes consistent with the module: arbitrary ORL feature dim,
    # fc3 out = 40 classes.  Batch deliberately not a multiple of 8 and
    # in_dim not a multiple of 128 to exercise the partial-block path.
    B, D_in = 37, 200

    key = jax.random.PRNGKey(0)
    ks = jax.random.split(key, 7)
    x = jax.random.normal(ks[0], (B, D_in), dtype=jnp.float32)

    def linear_init(kw, kb, fan_out, fan_in):
        # PyTorch Linear default init: U(-1/sqrt(fan_in), 1/sqrt(fan_in)).
        bound = 1.0 / jnp.sqrt(jnp.float32(fan_in))
        w = jax.random.uniform(kw, (fan_out, fan_in), jnp.float32, -bound, bound)
        b = jax.random.uniform(kb, (fan_out,), jnp.float32, -bound, bound)
        return w, b

    w1, b1 = linear_init(ks[1], ks[2], 128, D_in)
    w2, b2 = linear_init(ks[3], ks[4], 64, 128)
    w3, b3 = linear_init(ks[5], ks[6], 40, 64)

    # One-time parameter preprocessing (collapse + pad), then the kernel call.
    w_eff_p, b_eff_p, d_out = prepare_discriminator_params(w1, b1, w2, b2, w3, b3)
    w_eff_p, b_eff_p = jax.block_until_ready((w_eff_p, b_eff_p))

    y = discriminator_forward(x, w_eff_p, b_eff_p, d_out)
    y = jax.block_until_ready(y)

    y_ref = _ref_forward(x, w1, b1, w2, b2, w3, b3)
    assert y.shape == (B, 40)
    assert jnp.allclose(y, y_ref, atol=2e-4, rtol=2e-4)

    print("KERNEL_OK")
</pallas_src>

<mosaic_0001>
module attributes {stable_mosaic.version = 11 : i64} {
  func.func @_discriminator_kernel(%arg0: i32, %arg1: memref<24x200xf32, #tpu.memory_space<vmem>>, %arg2: memref<200x128xf32, #tpu.memory_space<vmem>>, %arg3: memref<1x128xf32, #tpu.memory_space<vmem>>, %arg4: memref<24x128xf32, #tpu.memory_space<vmem>>) attributes {dimension_semantics = [#tpu.dimension_semantics<parallel>], iteration_bounds = array<i64: 2>, scalar_prefetch = 0 : i64, scratch_operands = 0 : i64, tpu.core_type = #tpu.core_type<tc>, window_params = [{transform_indices = @transform_0, window_bounds = array<i64: 24, 200>}, {pipeline_mode = #tpu.pipeline_mode<synchronous>, transform_indices = @transform_1, window_bounds = array<i64: 200, 128>}, {pipeline_mode = #tpu.pipeline_mode<synchronous>, transform_indices = @transform_2, window_bounds = array<i64: 1, 128>}, {transform_indices = @transform_3, window_bounds = array<i64: 24, 128>}]} {
    %c0 = arith.constant 0 : index
    %c0_0 = arith.constant 0 : index
    %0 = vector.load %arg1[%c0, %c0_0] : memref<24x200xf32, #tpu.memory_space<vmem>>, vector<24x200xf32>
    %c0_1 = arith.constant 0 : index
    %c0_2 = arith.constant 0 : index
    %1 = vector.load %arg2[%c0_1, %c0_2] : memref<200x128xf32, #tpu.memory_space<vmem>>, vector<200x128xf32>
    %cst = arith.constant dense<0.000000e+00> : vector<24x128xf32>
    %2 = tpu.matmul %0, %1, %cst {dimension_numbers = #tpu.dot_dimension_numbers<[1], [0], [0], [1], [0, 0, 1, 1], [], []>} : vector<24x200xf32>, vector<200x128xf32>, vector<24x128xf32> -> vector<24x128xf32>
    %c0_3 = arith.constant 0 : index
    %c0_4 = arith.constant 0 : index
    %3 = vector.load %arg3[%c0_3, %c0_4] : memref<1x128xf32, #tpu.memory_space<vmem>>, vector<1x128xf32>
    %4 = vector.broadcast %3 : vector<1x128xf32> to vector<24x128xf32>
    %5 = arith.addf %2, %4 : vector<24x128xf32>
    %cst_5 = arith.constant 5.000000e-01 : f32
    %6 = vector.broadcast %cst_5 : f32 to vector<24x128xf32>
    %7 = arith.mulf %6, %5 : vector<24x128xf32>
    %8 = math.tanh %7 : vector<24x128xf32>
    %cst_6 = arith.constant 1.000000e+00 : f32
    %9 = vector.broadcast %cst_6 : f32 to vector<24x128xf32>
    %10 = arith.addf %8, %9 : vector<24x128xf32>
    %cst_7 = arith.constant 5.000000e-01 : f32
    %11 = vector.broadcast %cst_7 : f32 to vector<24x128xf32>
    %12 = arith.mulf %11, %10 : vector<24x128xf32>
    %c0_8 = arith.constant 0 : index
    %c0_9 = arith.constant 0 : index
    %13 = vector.load %arg4[%c0_8, %c0_9] : memref<24x128xf32, #tpu.memory_space<vmem>>, vector<24x128xf32>
    tpu.vector_store %arg4[%c0_8, %c0_9], %12 {strides = array<i32>} : memref<24x128xf32, #tpu.memory_space<vmem>>, vector<24x128xf32>,
    return
  }
  func.func @transform_0(%arg0: i32) -> (i32, i32) {
    %c0_i32 = arith.constant 0 : i32
    %c0_i32_0 = arith.constant 0 : i32
    return %arg0, %c0_i32 : i32, i32
  }
  func.func @transform_1(%arg0: i32) -> (i32, i32) {
    %c0_i32 = arith.constant 0 : i32
    %c0_i32_0 = arith.constant 0 : i32
    %c0_i32_1 = arith.constant 0 : i32
    return %c0_i32, %c0_i32_0 : i32, i32
  }
  func.func @transform_2(%arg0: i32) -> (i32, i32) {
    %c0_i32 = arith.constant 0 : i32
    %c0_i32_0 = arith.constant 0 : i32
    %c0_i32_1 = arith.constant 0 : i32
    return %c0_i32, %c0_i32_0 : i32, i32
  }
  func.func @transform_3(%arg0: i32) -> (i32, i32) {
    %c0_i32 = arith.constant 0 : i32
    %c0_i32_0 = arith.constant 0 : i32
    return %arg0, %c0_i32 : i32, i32
  }
}

</mosaic_0001>

<bundles_post_ra>
// kernel: tpu_custom_call.1
= control target key start
LH: loop header
LB: loop body
LE: loop exit
PB: predicated region body
PF: predicated region fallthrough
CT: control target
= control target key end

     0   :  { %8 = vsyncpa [#allocation3], 0  ;;  %s966_s0 = inlined_call_operand.hbm [shape: f32[37,200], index: 0, kind: input, shape index: {}]   ;;  %s967_s1 = inlined_call_operand.hbm [shape: f32[200,128], index: 1, kind: input, shape index: {}]   ;;  %s968_s2 = inlined_call_operand.vmem [shape: f32[1,128], index: 2, kind: input, shape index: {}]   ;;  %s969_s3 = inlined_call_operand.hbm [shape: f32[37,128], index: 3, kind: output, shape index: {}]  }
   0x1   :  { %10 = vsyncpa [#allocation3 + $0x1], 0 }
   0x2   :  { %11 = vsyncpa [#allocation6], 0 }
   0x3   :  { %12 = vsyncpa [#allocation4], 0 }
   0x4   :  { %14 = vsyncpa [#allocation4 + $0x1], 0  ;;  %s753_s12 = smov 0   ;;  %s755_s13 = smov 0  }
   0x5   :  { %s757_s14 = smov 0   ;;  %s759_s15 = smov 0  }
   0x6 LB: > { %s774_s16 = sadd.s32 4294967295, %s722_s15   ;;  %s446_s17 = sadd.s32 4294967294, %s722_s15   ;;  %s722_s15 = sphi %s759_s15, %s986_s15   ;;  %s718_s14 = sphi %s757_s14, %s985_s14   ;;  %s714_s13 = sphi %s755_s13, %s984_s13   ;;  %s710_s12 = sphi %s753_s12, %s983_s12  }
   0x7   : > { %s778_s18 = sadd.s32 1, %s722_s15   ;;  %s27_s19 = sadd.s32 1, %s718_s14 }
   0x8   : > { %s24_s20 = ssub.s32 %s722_s15, %s778_s18  ;;  %p34_p0 = scmp.ne.s32.totalorder %s718_s14, %s714_s13 }
   0x9   : > { %p25_p1 = scmp.eq.s32.totalorder %s24_s20, 0  ;;  %p35_p2 = scmp.eq.s32.totalorder %s722_s15, 0 }
   0xa   : > { %p40_p3 = scmp.ne.s32.totalorder %s714_s13, %s710_s12  ;;  %p971_p4 = scmp.eq.s32.totalorder %s774_s16, 0 }
   0xb   : > { %s790_s21 = scalar_select %p25_p1, %s718_s14, %s27_s19  }
   0xc   : > { %p792_p5 = por %p35_p2, %p34_p0  ;;  %p798_p6 = por %p971_p4, %p40_p3 }
   0xd   : > { %p106_p7 = scmp.eq.s32.totalorder %s774_s16, 1  ;;  %p112_p8 = scmp.eq.s32.totalorder %s446_s17, 1 }
   0xe   : > { %p447_p9 = scmp.ge.s32.totalorder %s722_s15, 1  ;;  %p119_p10 = scmp.lt.s32.totalorder %s722_s15, 3 }
   0xf   : > { %p805_p11 = por %p106_p7, %p34_p0  ;;  %p809_p12 = por %p112_p8, %p40_p3 }
  0x10   : > { %p813_p13 = pnand %p447_p9, %p119_p10  ;;  %s130_s29 = sshll.u32 %s967_s1, 4  ;;  %s131_s29 = int_to_ptr.hbm [resolvable:$true] %s130_s29 }
  0x11   : > { %s975_s25 = scalar_select %p809_p12, 1, 0 }
  0x12   : > { %p515_p1 = pneg %p813_p13  ;;  %s724_s30 = smov [#allocation5]  }
  0x13   : > { %s132_s4 = sshll.u32 %s724_s30, 4  ;;  %s725_s5 = smov 128   ;;  %s133_s4 = int_to_ptr.vmem [resolvable:$true] %s132_s4 }
  0x14   : > { %p516_p0 = pnand %p515_p1, %p971_p4  ;;  %s726_s6 = smov 8  }
  0x15   : > { %p970_p2 = scmp.ge.s32.totalorder %s722_s15, 2 }
  0x16   : > { %518 = dma.hbm_to_vmem [thread:$0]  (!%p516_p0), %s131_s29, 3200, %s133_s4, [#allocation6], %s725_s5, %s725_s5, %s726_s6  }
  0x17   : > { %145 = sbr.rel (%p970_p2) target bundleno = 66 (0x42), region = 24 }
  0x1c   : > { %148 = sbr.rel (!%p792_p5) target bundleno = 66 (0x42), region = 28  ;;  %s149_s7 = sand.u32 (%p792_p5), 1, %s718_s14  }
  0x1d   : > { %s154_s8 = smul.u32 (%p792_p5), 3, %s722_s15  ;;  %s834_s20 = scalar_lea.sflag (%p792_p5), [#allocation3], %s149_s7 }
  0x1e   : > { %s506_s9 = smul.u32 (%p792_p5), 48, %s149_s7 }
  0x1f   : > { %s155_s10 = ssub.s32 (%p792_p5), 5, %s154_s8 }
  0x20   : > { %p156_p3 = scmp.lt.s32.totalorder (%p792_p5), %s155_s10, 3  ;;  %s153_s27 = scalar_lea.vmem (%p792_p5), [#allocation2], %s506_s9 }
  0x22   : > { %s988_s10 = smov (!%p156_p3, %s155_s10), 3 }
  0x23   : > { %s469_s11 = sshll.u32 %s988_s10, 4 }
  0x24   : > { %s160_s17 = ssub.s32 48, %s469_s11 }
  0x25   : > { %s161_s19 = sshll.u32 %s160_s17, 4 }
  0x26   : > { %162 = vsyncadd %s834_s20, %s161_s19  ;;  %p837_p5 = scmp.ne.s32.totalorder %s469_s11, 0  ;;  %s473_s28 = smul.u32 48, %s722_s15 }
  0x27   : > { %s842_s29 = sshll.u32 %s153_s27, 4  ;;  %s456_s30 = sshll.u32 %s988_s10, 8  ;;  %s171_s29 = int_to_ptr.vmem [resolvable:$true] %s842_s29 }
  0x28   : > { %s166_s6 = scalar_lea.hbm %s966_s0, %s473_s28  ;;  %s604_s9 = sshrl.u32 %s456_s30, 4 }
  0x29   : > { %s168_s7 = sshll.u32 %s166_s6, 4  ;;  %s613_s27 = scalar_lea.hbm %s966_s0, 80  ;;  %s849_s7 = int_to_ptr.hbm [resolvable:$true] %s168_s7 }
  0x2a   : > { %s602_s8 = sshra.s32 %s849_s7, 4  ;;  %s603_s8 = int_to_ptr.hbm [resolvable:$true] %s602_s8 }
  0x2b   : > { %s609_s11 = scalar_lea.hbm %s603_s8, %s604_s9  ;;  %p614_p10 = scmp.lt.s32.totalorder %s603_s8, %s966_s0 }
  0x2c   : > { %p610_p7 = scmp.ne.s32.totalorder %s603_s8, %s609_s11  ;;  %p615_p1 = scmp.lt.s32.totalorder %s613_s27, %s609_s11 }
  0x2e   : > { %p611_p8 = pnand %p610_p7, %p837_p5  ;;  %p616_p0 = por %p615_p1, %p614_p10 }
  0x30   : > { %p612_p9 = pneg %p611_p8 }
  0x32   : > { %p617_p3 = pnand %p616_p0, %p612_p9 }
  0x34   : > { %620 = shalt.err (!%p617_p3)
}
  0x35   : > { %s621_s5 = sshra.s32 %s171_s29, 4  ;;  %s727_s17 = smov [#allocation2]   ;;  %s622_s5 = int_to_ptr.vmem [resolvable:$true] %s621_s5 }
  0x36   : > { %s628_s6 = scalar_lea.vmem %s622_s5, %s604_s9  ;;  %s632_s19 = scalar_lea.vmem %s727_s17, 96 }
  0x37   : > { %p629_p7 = scmp.ne.s32.totalorder %s622_s5, %s628_s6  ;;  %p634_p4 = scmp.lt.s32.totalorder %s632_s19, %s628_s6 }
  0x39   : > { %p630_p8 = pnand %p629_p7, %p837_p5 }
  0x3b   : > { %p631_p2 = pneg %p630_p8 }
  0x3d   : > { %p636_p12 = pnand %p634_p4, %p631_p2 }
  0x3f   : > { %639 = shalt.err (!%p636_p12)
}
  0x40   : > { %s728_s8 = smov 256   ;;  %s729_s11 = smov 16  }
  0x41   : > { %176 = dma.hbm_to_vmem [thread:$0]  (%p837_p5), %s849_s7, %s456_s30, %s171_s29, %s834_s20, %s728_s8, %s728_s8, %s729_s11  }
  0x42 PF: > { %182 = sbr.rel (%p813_p13) target bundleno = 290 (0x122), region = 32  ;;  %s877_s9 = sand.u32 (!%p813_p13), 1, %s714_s13  }
  0x43   : > { %s507_s27 = smul.u32 (!%p813_p13), 48, %s877_s9  ;;  %s185_s4 = scalar_lea.sflag (!%p813_p13), [#allocation3], %s877_s9 }
  0x45   : > { %s881_s28 = scalar_lea.vmem (!%p813_p13), [#allocation2], %s507_s27 }
  0x47   : > { %697 = dma.done.wait (%p798_p6), %s185_s4, 768  }
  0x48   : > { %699 = vsyncadd (%p798_p6), %s185_s4, 4294966528  ;;  %p978_p4 = scmp.eq.s32.totalorder %s774_s16, 0 }
  0x4a   : > { %701 = dma.done.wait (%p978_p4), [#allocation6], 3200   ;;  %p979_p12 = pmov %p978_p4 }
  0x4b   : > { %v249_v0 = vld [vmem:[#allocation5 + $0x78] sm:$0xff]  ;;  %v248_v1 = vld [vmem:[#allocation5 + $0x70] sm:$0xff]  ;;  %v258_v2 = vld [vmem:[#allocation5 + $0xc0] sm:$0xff]  ;;  %vm263_vm0 = vcmask 588800   ;;  %s508_s10 = smul.u32 24, %s877_s9  ;;  %s341_s22 = scalar_lea.sflag [#allocation4], %s877_s9 }
  0x4c   : > { %703 = vsyncadd (%p979_p12), [#allocation6], 4294964096  ;;  %273 = vmatpush.msra.mxu0 %v249_v0  ;;  %474 = vmatpush.msra.mxu2 %v249_v0  ;;  %v247_v3 = vld [vmem:[#allocation5 + $0x68] sm:$0xff]  ;;  %v257_v4 = vld [vmem:[#allocation5 + $0xb8] sm:$0xff]  ;;  %s348_s29 = smul.u32 (%p805_p11), 3, %s774_s16 }
  0x4d   : > { %475 = vmatpush.msra.mxu3 %v249_v0  ;;  %306 = vmatpush.msra.mxu1 %v258_v2  ;;  %v256_v5 = vld [vmem:[#allocation5 + $0xb0] sm:$0xff]  ;;  %v246_v6 = vld [vmem:[#allocation5 + $0x60] sm:$0xff]  ;;  %v255_v7 = vld [vmem:[#allocation5 + $0xa8] sm:$0xff]  ;;  %s216_s20 = scalar_lea.vmem [#allocation7], %s508_s10 }
  0x4e   : > { %274 = vmatpush.msra.mxu0 %v248_v1  ;;  %476 = vmatpush.msra.mxu2 %v248_v1  ;;  %v245_v8 = vld [vmem:[#allocation5 + $0x58] sm:$0xff]  ;;  %v254_v9 = vld [vmem:[#allocation5 + $0xa0] sm:$0xff]  ;;  %v244_v10 = vld [vmem:[#allocation5 + $0x50] sm:$0xff]  ;;  %s349_s30 = ssub.s32 (%p805_p11), 5, %s348_s29 }
  0x4f   : > { %477 = vmatpush.msra.mxu3 %v248_v1  ;;  %307 = vmatpush.msra.mxu1 %v257_v4  ;;  %v253_v11 = vld [vmem:[#allocation5 + $0x98] sm:$0xff]  ;;  %v243_v12 = vld [vmem:[#allocation5 + $0x48] sm:$0xff]  ;;  %v252_v13 = vld [vmem:[#allocation5 + $0x90] sm:$0xff]  ;;  %p350_p6 = scmp.lt.s32.totalorder (%p805_p11), %s349_s30, 3 }
  0x50   : > { %275 = vmatpush.msra.mxu0 %v247_v3  ;;  %478 = vmatpush.msra.mxu2 %v247_v3  ;;  %v242_v14 = vld [vmem:[#allocation5 + $0x40] sm:$0xff]  ;;  %v251_v15 = vld [vmem:[#allocation5 + $0x88] sm:$0xff]  ;;  %v241_v16 = vld [vmem:[#allocation5 + $0x38] sm:$0xff] }
  0x51   : > { %479 = vmatpush.msra.mxu3 %v247_v3  ;;  %308 = vmatpush.msra.mxu1 %v256_v5  ;;  %v250_v17 = vld [vmem:[#allocation5 + $0x80] sm:$0xff]  ;;  %v240_v18 = vld [vmem:[#allocation5 + $0x30] sm:$0xff]  ;;  %v229_v19 = vld [vmem:[%s881_s28 + $0x8] sm:$0xff] }
  0x52   : > { %276 = vmatpush.msra.mxu0 %v246_v6  ;;  %480 = vmatpush.msra.mxu2 %v246_v6  ;;  %v239_v20 = vld [vmem:[#allocation5 + $0x28] sm:$0xff]  ;;  %v238_v21 = vld [vmem:[#allocation5 + $0x20] sm:$0xff]  ;;  %v237_v22 = vld [vmem:[#allocation5 + $0x18] sm:$0xff] }
  0x53   : > { %481 = vmatpush.msra.mxu3 %v246_v6  ;;  %309 = vmatpush.msra.mxu1 %v255_v7  ;;  %v236_v23 = vld [vmem:[#allocation5 + $0x10] sm:$0xff]  ;;  %v231_v24 = vld [vmem:[%s881_s28 + $0x18] sm:$0xff]  ;;  %v234_v26 = vld [vmem:[#allocation5] sm:$0xff] }
  0x54   : > { %277 = vmatpush.msra.mxu0 %v245_v8  ;;  %482 = vmatpush.msra.mxu2 %v245_v8  ;;  %v235_v25 = vld [vmem:[#allocation5 + $0x8] sm:$0xff]  ;;  %v228_v27 = vld [vmem:[%s881_s28] sm:$0xff]  ;;  %v230_v28 = vld [vmem:[%s881_s28 + $0x10] sm:$0xff] }
  0x55   : > { %483 = vmatpush.msra.mxu3 %v245_v8  ;;  %310 = vmatpush.msra.mxu1 %v254_v9  ;;  %v232_v29 = vld [vmem:[%s881_s28 + $0x20] sm:$0xff]  ;;  %v233_v30 = vld [vmem:[%s881_s28 + $0x28] sm:$0xff] }
  0x56   : > { %278 = vmatpush.msra.mxu0 %v244_v10  ;;  %484 = vmatpush.msra.mxu2 %v244_v10  ;;  %v565_v33 = vld [vmem:[%s968_s2] ss:$0 sm:$0xff] }
  0x57   : > { %485 = vmatpush.msra.mxu3 %v244_v10  ;;  %311 = vmatpush.msra.mxu1 %v253_v11 }
  0x58   : > { %279 = vmatpush.msra.mxu0 %v243_v12  ;;  %486 = vmatpush.msra.mxu2 %v243_v12 }
  0x59   : > { %487 = vmatpush.msra.mxu3 %v243_v12  ;;  %312 = vmatpush.msra.mxu1 %v252_v13 }
  0x5a   : > { %280 = vmatpush.msra.mxu0 %v242_v14  ;;  %488 = vmatpush.msra.mxu2 %v242_v14 }
  0x5b   : > { %489 = vmatpush.msra.mxu3 %v242_v14  ;;  %313 = vmatpush.msra.mxu1 %v251_v15 }
  0x5c   : > { %281 = vmatpush.msra.mxu0 %v241_v16  ;;  %490 = vmatpush.msra.mxu2 %v241_v16 }
  0x5d   : > { %491 = vmatpush.msra.mxu3 %v241_v16  ;;  %314 = vmatpush.msra.mxu1 %v250_v17 }
  0x5e   : > { %282 = vmatpush.msra.mxu0 %v240_v18  ;;  %492 = vmatpush.msra.mxu2 %v240_v18 }
  0x5f   : > { %493 = vmatpush.msra.mxu3 %v240_v18  ;;  %459 = vmatmul.msk.f32.vlgmr.msra.gmra.mxu1 %vm263_vm0, %v229_v19 }
  0x60   : > { %283 = vmatpush.msra.mxu0 %v239_v20  ;;  %494 = vmatpush.msra.mxu2 %v239_v20 }
  0x61   : > { %495 = vmatpush.msra.mxu3 %v239_v20 }
  0x62   : > { %284 = vmatpush.msra.mxu0 %v238_v21  ;;  %496 = vmatpush.msra.mxu2 %v238_v21 }
  0x63   : > { %497 = vmatpush.msra.mxu3 %v238_v21 }
  0x64   : > { %285 = vmatpush.msra.mxu0 %v237_v22  ;;  %498 = vmatpush.msra.mxu2 %v237_v22 }
  0x65   : > { %499 = vmatpush.msra.mxu3 %v237_v22 }
  0x66   : > { %286 = vmatpush.msra.mxu0 %v236_v23  ;;  %500 = vmatpush.msra.mxu2 %v236_v23 }
  0x67   : > { %501 = vmatpush.msra.mxu3 %v236_v23  ;;  %460 = vmatmul.msk.f32.gmra.mxu1 %vm263_vm0, %v231_v24 }
  0x68   : > { %287 = vmatpush.msra.mxu0 %v235_v25  ;;  %502 = vmatpush.msra.mxu2 %v235_v25 }
  0x69   : > { %503 = vmatpush.msra.mxu3 %v235_v25 }
  0x6a   : > { %288 = vmatpush.msra.mxu0 %v234_v26  ;;  %504 = vmatpush.msra.mxu2 %v234_v26 }
  0x6b   : > { %505 = vmatpush.msra.mxu3 %v234_v26  ;;  %289 = vmatmul.f32.vlgmr.msra.gmra.mxu0 %v228_v27 }
  0x6c   : > { %292 = vmatmul.f32.vlgmr.msra.gmra.mxu2 %v230_v28  ;;  %295 = vmatmul.f32.vlgmr.msra.gmra.mxu3 %v232_v29 }
  0x6f   : > { %461 = vmatmul.msk.f32.gmra.mxu1 %vm263_vm0, %v233_v30 }
  0xdc   : > { %v316_v31 = vpop.f32.mrf.mxu1 }
  0xe4   : > { %v319_v32 = vpop.f32.mrf.mxu1 }
  0xe8   : > { %v290_v34 = vpop.f32.mrf.mxu0 }
  0xe9   : > { %v291_v35 = vadd.f32 %v565_v33, %v290_v34 }
  0xeb   : > { %v317_v36 = vadd.f32 %v316_v31, %v291_v35 }
  0xec   : > { %v322_v38 = vpop.f32.mrf.mxu1 }
  0xed   : > { %v325_v37 = vmul.f32 0.5, %v317_v36 }
  0xef   : > { %566 = vtanh.f32 %v325_v37  ;;  %v293_v39 = vpop.f32.mrf.mxu2  ;;  %v296_v40 = vpop.f32.mrf.mxu3 }
  0xf0   : > { %v294_v41 = vadd.f32 %v565_v33, %v293_v39  ;;  %v297_v42 = vadd.f32 %v565_v33, %v296_v40 }
  0xf2   : > { %v320_v43 = vadd.f32 %v319_v32, %v294_v41  ;;  %v323_v44 = vadd.f32 %v322_v38, %v297_v42 }
  0xf4   : > { %v326_v45 = vmul.f32 0.5, %v320_v43  ;;  %v327_v46 = vmul.f32 0.5, %v323_v44 }
  0xf5   : > { %v567_v47 = vpop.eup %566 }
  0xf6   : > { %v331_v48 = vadd.f32 1.0, %v567_v47  ;;  %568 = vtanh.f32 %v326_v45 }
  0xf7   : > { %570 = vtanh.f32 %v327_v46 }
  0xf8   : > { %v334_v49 = vmul.f32 0.5, %v331_v48 }
  0xfa   : > { %337 = vst [vmem:[%s216_s20] sm:$0xff] %v334_v49 }
  0xfc   : > { %v569_v50 = vpop.eup %568 }
  0xfd   : > { %v571_v51 = vpop.eup %570  ;;  %v332_v52 = vadd.f32 1.0, %v569_v50 }
  0xfe   : > { %v333_v53 = vadd.f32 1.0, %v571_v51  ;;  %347 = sbr.rel (!%p805_p11) target bundleno = 290 (0x122), region = 44 }
  0xff   : > { %v335_v54 = vmul.f32 0.5, %v332_v52 }
 0x100   : > { %v336_v55 = vmul.f32 0.5, %v333_v53 }
 0x101   : > { %338 = vst [vmem:[%s216_s20 + $0x8] sm:$0xff] %v335_v54 }
 0x102   : > { %339 = vst [vmem:[%s216_s20 + $0x10] sm:$0xff] %v336_v55 }
 0x103   : > { %s990_s30 = smov (!%p350_p6, %s349_s30), 3 }
 0x104   : > { %s462_s7 = sshll.u32 %s990_s30, 3 }
 0x105   : > { %s353_s5 = ssub.s32 24, %s462_s7 }
 0x106   : > { %s354_s6 = sshll.u32 %s353_s5, 4 }
 0x107   : > { %355 = vsyncadd %s341_s22, %s354_s6  ;;  %p913_p13 = scmp.ne.s32.totalorder %s462_s7, 0  ;;  %s472_s24 = smul.u32 24, %s774_s16 }
 0x108   : > { %s360_s19 = sshll.u32 %s216_s20, 4  ;;  %s466_s8 = sshll.u32 %s990_s30, 7  ;;  %s922_s19 = int_to_ptr.vmem [resolvable:$true] %s360_s19 }
 0x109   : > { %s358_s4 = scalar_lea.hbm %s969_s3, %s472_s24  ;;  %s641_s23 = sshra.s32 %s922_s19, 4  ;;  %s642_s23 = int_to_ptr.vmem [resolvable:$true] %s641_s23 }
 0x10a   : > { %s362_s28 = sshll.u32 %s358_s4, 4  ;;  %s643_s26 = sshrl.u32 %s466_s8, 4  ;;  %s924_s28 = int_to_ptr.hbm [resolvable:$true] %s362_s28 }
 0x10b   : > { %s648_s10 = scalar_lea.vmem %s642_s23, %s643_s26  ;;  %s730_s16 = smov [#allocation7]  }
 0x10c   : > { %p649_p11 = scmp.ne.s32.totalorder %s642_s23, %s648_s10  ;;  %s652_s20 = scalar_lea.vmem %s730_s16, 48 }
 0x10d   : > { %p654_p9 = scmp.lt.s32.totalorder %s652_s20, %s648_s10 }
 0x10e   : > { %p650_p2 = pnand %p649_p11, %p913_p13 }
 0x110   : > { %p651_p5 = pneg %p650_p2 }
 0x112   : > { %p656_p10 = pnand %p654_p9, %p651_p5 }
 0x114   : > { %659 = shalt.err (!%p656_p10)
}
 0x115   : > { %s660_s29 = sshra.s32 %s924_s28, 4  ;;  %s671_s24 = scalar_lea.hbm %s969_s3, 40  ;;  %s661_s29 = int_to_ptr.hbm [resolvable:$true] %s660_s29 }
 0x116   : > { %s667_s7 = scalar_lea.hbm %s661_s29, %s643_s26  ;;  %p672_p7 = scmp.lt.s32.totalorder %s661_s29, %s969_s3 }
 0x117   : > { %p668_p1 = scmp.ne.s32.totalorder %s661_s29, %s667_s7  ;;  %p673_p8 = scmp.lt.s32.totalorder %s671_s24, %s667_s7 }
 0x119   : > { %p669_p0 = pnand %p668_p1, %p913_p13  ;;  %p674_p4 = por %p673_p8, %p672_p7 }
 0x11b   : > { %p670_p3 = pneg %p669_p0 }
 0x11d   : > { %p675_p12 = pnand %p674_p4, %p670_p3 }
 0x11f   : > { %678 = shalt.err (!%p675_p12)
}
 0x120   : > { %s731_s4 = smov 128   ;;  %s732_s23 = smov 8  }
 0x121   : > { %368 = dma.vmem_to_hbm [thread:$0]  (%p913_p13), %s922_s19, %s466_s8, %s924_s28, %s341_s22, %s731_s4, %s731_s4, %s732_s23  }
 0x122 PF: > { %s377_s26 = sand.u32 1, %s710_s12   ;;  %p981_p6 = scmp.ne.s32.totalorder %s975_s25, 0 }
 0x123   : > { %p982_p11 = scmp.ge.s32.totalorder %s722_s15, 2  ;;  %s378_s10 = scalar_lea.sflag [#allocation4], %s377_s26 }
 0x125   : > { %p520_p2 = pnand %p982_p11, %p981_p6 }
 0x127   : > { %p521_p5 = pneg %p520_p2 }
 0x129   : > { %705 = dma.done.wait (%p521_p5), %s378_s10, 384  }
 0x12a   : > { %707 = vsyncadd (%p521_p5), %s378_s10, 4294966912  ;;  %p17_p9 = scmp.ge.s32.totalorder %s778_s18, 4   ;;  %s983_s12 = smov %s714_s13 }
 0x12b   : > { %s984_s13 = smov %s718_s14  ;;  %s985_s14 = smov %s790_s21 }
 0x12c   : > { %s986_s15 = smov %s778_s18  ;;  %19 = sbr.rel (!%p17_p9) target bundleno = 6 (0x6), region = 81 }
 0x131   :  { %384 = vsyncpa [#allocation3], 1 }
 0x132   :  { %386 = vsyncpa [#allocation3 + $0x1], 1 }
 0x133   :  { %387 = vsyncpa [#allocation6], 1 }
 0x134   :  { %388 = vsyncpa [#allocation4], 1 }
 0x135   :  { %390 = vsyncpa [#allocation4 + $0x1], 1 }

</bundles_post_ra>
